<compile_context>
chip_gen: v7x
topology: tpu7x:2x2x1
jax: 0.10.0
libtpu: 0.0.40
codegen_flags: <defaults>
</compile_context>

<pallas_src>
import functools

import jax
import jax.numpy as jnp
from jax.experimental import pallas as pl
from jax.experimental.pallas import tpu as pltpu


def _round_up(x, m):
    return (x + m - 1) // m * m


# ----------------------------- Pallas kernels -----------------------------

def _linear_kernel(x_ref, w_ref, out_ref):
    # out = x_tile @ w   (bf16 MXU inputs, f32 accumulation)
    out_ref[...] = jnp.dot(
        x_ref[...], w_ref[...], preferred_element_type=jnp.float32
    ).astype(out_ref.dtype)


def _agg_relu_linear_kernel(adj_ref, xw_ref, b1_ref, w2_ref, out_ref, acc_ref):
    # acc += adj_tile @ xw_tile  over the graph (K) axis;
    # on the last K step: out_tile = relu(acc + b1) @ w2.
    k = pl.program_id(1)

    @pl.when(k == 0)
    def _():
        acc_ref[...] = jnp.zeros_like(acc_ref)

    acc_ref[...] += jnp.dot(
        adj_ref[...], xw_ref[...], preferred_element_type=jnp.float32
    )

    @pl.when(k == pl.num_programs(1) - 1)
    def _():
        h1 = jnp.maximum(acc_ref[...] + b1_ref[...], 0.0)  # f32 elementwise
        out_ref[...] = jnp.dot(
            h1.astype(jnp.bfloat16), w2_ref[...], preferred_element_type=jnp.float32
        ).astype(out_ref.dtype)


def _agg_logsoftmax_kernel(adj_ref, hw_ref, b2_ref, out_ref, acc_ref, *, num_classes):
    # acc += adj_tile @ hw_tile  over the graph (K) axis;
    # on the last K step: out_tile = log_softmax(acc + b2) over (padded) classes.
    k = pl.program_id(1)

    @pl.when(k == 0)
    def _():
        acc_ref[...] = jnp.zeros_like(acc_ref)

    acc_ref[...] += jnp.dot(
        adj_ref[...], hw_ref[...], preferred_element_type=jnp.float32
    )

    @pl.when(k == pl.num_programs(1) - 1)
    def _():
        logits = acc_ref[...] + b2_ref[...]
        # Mask padded class lanes so they don't pollute max / sum-exp.
        lane = jax.lax.broadcasted_iota(jnp.int32, logits.shape, 1)
        logits = jnp.where(lane < num_classes, logits, jnp.float32(-1e30))
        m = jnp.max(logits, axis=1, keepdims=True)
        z = logits - m
        lse = jnp.log(jnp.sum(jnp.exp(z), axis=1, keepdims=True))
        out_ref[...] = z - lse


# ------------------------------- Wrapper ----------------------------------

def gcn_forward(adj_norm, x, w1, b1, w2, b2, *, tm=256, tk=512):
    """Forward pass: log_softmax(Ahat @ relu(Ahat @ (X@W1) + b1) @ W2 + b2)."""
    N, F = x.shape
    H = w1.shape[1]
    C = w2.shape[1]

    # Lane-dense padding of feature/class dims.
    Fp = _round_up(F, 128)
    Hp = _round_up(H, 128)
    Cp = _round_up(C, 128)

    # Node dim padded to a multiple of 128; power-of-two tiles always divide it.
    Np = _round_up(N, 128)
    tm = max(int(tm), 16)
    tk = max(int(tk), 128)
    TM = 16
    while TM * 2 <= min(tm, Np) and Np % (TM * 2) == 0:
        TM *= 2
    TK = 128
    while TK * 2 <= min(tk, Np) and Np % (TK * 2) == 0:
        TK *= 2
    n_tiles = Np // TM
    k_tiles = Np // TK

    # Zero-padding keeps the math exact; matmul operands cast to bf16 (halves the
    # adjacency byte stream), biases stay f32.
    adj_p = jnp.pad(adj_norm, ((0, Np - N), (0, Np - N))).astype(jnp.bfloat16)
    x_p = jnp.pad(x, ((0, Np - N), (0, Fp - F))).astype(jnp.bfloat16)
    w1_p = jnp.pad(w1, ((0, Fp - F), (0, Hp - H))).astype(jnp.bfloat16)
    w2_p = jnp.pad(w2, ((0, Hp - H), (0, Cp - C))).astype(jnp.bfloat16)
    b1_p = jnp.pad(b1.astype(jnp.float32), ((0, 0), (0, Hp - H)))
    b2_p = jnp.pad(b2.astype(jnp.float32), ((0, 0), (0, Cp - C)))

    cparams_1d = pltpu.CompilerParams(
        dimension_semantics=("parallel",),
        vmem_limit_bytes=48 * 1024 * 1024,
    )
    cparams_2d = pltpu.CompilerParams(
        dimension_semantics=("parallel", "arbitrary"),
        vmem_limit_bytes=48 * 1024 * 1024,
    )

    # (1) Layer-1 feature transform: xw = X @ W1   (row-tiled over nodes).
    xw = pl.pallas_call(
        _linear_kernel,
        out_shape=jax.ShapeDtypeStruct((Np, Hp), jnp.bfloat16),
        grid=(n_tiles,),
        in_specs=[
            pl.BlockSpec((TM, Fp), lambda i: (i, 0)),
            pl.BlockSpec((Fp, Hp), lambda i: (0, 0)),
        ],
        out_specs=pl.BlockSpec((TM, Hp), lambda i: (i, 0)),
        compiler_params=cparams_1d,
    )(x_p, w1_p)

    # (2) Layer-1 aggregation + ReLU fused with layer-2 feature transform:
    #     hw = relu(Ahat @ xw + b1) @ W2   (adjacency + xw streamed in K tiles).
    hw = pl.pallas_call(
        _agg_relu_linear_kernel,
        out_shape=jax.ShapeDtypeStruct((Np, Cp), jnp.bfloat16),
        grid=(n_tiles, k_tiles),
        in_specs=[
            pl.BlockSpec((TM, TK), lambda i, k: (i, k)),  # adj tile (streamed)
            pl.BlockSpec((TK, Hp), lambda i, k: (k, 0)),  # xw K-tile (streamed)
            pl.BlockSpec((1, Hp), lambda i, k: (0, 0)),   # b1 resident
            pl.BlockSpec((Hp, Cp), lambda i, k: (0, 0)),  # w2 resident
        ],
        out_specs=pl.BlockSpec((TM, Cp), lambda i, k: (i, 0)),
        scratch_shapes=[pltpu.VMEM((TM, Hp), jnp.float32)],
        compiler_params=cparams_2d,
    )(adj_p, xw, b1_p, w2_p)

    # (3) Layer-2 aggregation + bias + log_softmax (lane-dense [TM, Cp] output slab).
    out_pad = pl.pallas_call(
        functools.partial(_agg_logsoftmax_kernel, num_classes=C),
        out_shape=jax.ShapeDtypeStruct((Np, Cp), jnp.float32),
        grid=(n_tiles, k_tiles),
        in_specs=[
            pl.BlockSpec((TM, TK), lambda i, k: (i, k)),  # adj tile (streamed)
            pl.BlockSpec((TK, Cp), lambda i, k: (k, 0)),  # hw K-tile (streamed)
            pl.BlockSpec((1, Cp), lambda i, k: (0, 0)),   # b2 resident
        ],
        out_specs=pl.BlockSpec((TM, Cp), lambda i, k: (i, 0)),
        scratch_shapes=[pltpu.VMEM((TM, Cp), jnp.float32)],
        compiler_params=cparams_2d,
    )(adj_p, hw, b2_p)

    return out_pad[:N, :C]


# ------------------------------- JAX glue ----------------------------------

def build_normalized_adjacency(edge_index, num_nodes):
    """Dense D^-1/2 (A + I) D^-1/2 from a [2, E] edge_index (PyG gcn_norm default).

    Matches add_remaining_self_loops semantics: the diagonal is forced to exactly 1
    even if edge_index already contains self-loops.
    """
    src, dst = edge_index[0], edge_index[1]
    A = jnp.zeros((num_nodes, num_nodes), jnp.float32)
    A = A.at[src, dst].set(1.0)
    A = jnp.maximum(A, A.T)                                   # symmetrize
    A_hat = jnp.where(jnp.eye(num_nodes, dtype=bool), 1.0, A)  # self-loops = 1 exactly
    deg = jnp.sum(A_hat, axis=1)
    d_inv_sqrt = 1.0 / jnp.sqrt(deg)
    return d_inv_sqrt[:, None] * A_hat * d_inv_sqrt[None, :]


def glorot(key, shape):
    fan_in, fan_out = shape
    limit = jnp.sqrt(6.0 / (fan_in + fan_out))
    return jax.random.uniform(key, shape, jnp.float32, -limit, limit)


if __name__ == "__main__":
    # Small synthetic "Cora-like" problem: N nodes, dim_in features, hidden=16, 7 classes.
    N, dim_in, dim_h, dim_out = 160, 48, 16, 7
    num_edges = 512

    key = jax.random.PRNGKey(0)
    k_x, k_e1, k_e2, k_w1, k_w2 = jax.random.split(key, 5)

    x = jax.random.normal(k_x, (N, dim_in), jnp.float32)
    src = jax.random.randint(k_e1, (num_edges,), 0, N)
    dst = jax.random.randint(k_e2, (num_edges,), 0, N)
    edge_index = jnp.stack([src, dst], axis=0)

    adj_norm = build_normalized_adjacency(edge_index, N)

    # GCNConv params kept in [in, out] layout so kernels do X @ W.
    w1 = glorot(k_w1, (dim_in, dim_h))
    b1 = jnp.zeros((1, dim_h), jnp.float32)
    w2 = glorot(k_w2, (dim_h, dim_out))
    b2 = jnp.zeros((1, dim_out), jnp.float32)

    # tm=32, tk=128 -> padded N=256 gives 8 row tiles x 2 K-tiles, so both the
    # pipelined grid path and the accumulator (init/finalize) path are exercised.
    out = gcn_forward(adj_norm, x, w1, b1, w2, b2, tm=32, tk=128)
    out = jax.block_until_ready(out)

    # Pure-f32 JAX reference of the same forward pass.  Tolerance is loose because
    # the kernel uses bf16 MXU inputs (f32 accumulation).
    h1_ref = jnp.maximum(adj_norm @ (x @ w1) + b1, 0.0)
    h2_ref = adj_norm @ (h1_ref @ w2) + b2
    ref = jax.nn.log_softmax(h2_ref, axis=1)

    assert out.shape == (N, dim_out)
    assert bool(jnp.all(jnp.isfinite(out))), "non-finite output"
    assert jnp.allclose(out, ref, atol=5e-2, rtol=5e-2), "mismatch vs f32 reference"

    print("KERNEL_OK")
</pallas_src>

<mosaic_0001>
module attributes {stable_mosaic.version = 11 : i64} {
  func.func @_linear_kernel(%arg0: i32, %arg1: memref<32x128xbf16, #tpu.memory_space<vmem>>, %arg2: memref<128x128xbf16, #tpu.memory_space<vmem>>, %arg3: memref<32x128xbf16, #tpu.memory_space<vmem>>) attributes {dimension_semantics = [#tpu.dimension_semantics<parallel>], iteration_bounds = array<i64: 8>, scalar_prefetch = 0 : i64, scratch_operands = 0 : i64, tpu.core_type = #tpu.core_type<tc>, window_params = [{transform_indices = @transform_0, window_bounds = array<i64: 32, 128>}, {pipeline_mode = #tpu.pipeline_mode<synchronous>, transform_indices = @transform_1, window_bounds = array<i64: 128, 128>}, {transform_indices = @transform_2, window_bounds = array<i64: 32, 128>}]} {
    %c0 = arith.constant 0 : index
    %c0_0 = arith.constant 0 : index
    %0 = vector.load %arg1[%c0, %c0_0] : memref<32x128xbf16, #tpu.memory_space<vmem>>, vector<32x128xbf16>
    %c0_1 = arith.constant 0 : index
    %c0_2 = arith.constant 0 : index
    %1 = vector.load %arg2[%c0_1, %c0_2] : memref<128x128xbf16, #tpu.memory_space<vmem>>, vector<128x128xbf16>
    %cst = arith.constant dense<0.000000e+00> : vector<32x128xf32>
    %2 = tpu.matmul %0, %1, %cst {dimension_numbers = #tpu.dot_dimension_numbers<[1], [0], [0], [1], [0, 0, 1, 1], [], []>} : vector<32x128xbf16>, vector<128x128xbf16>, vector<32x128xf32> -> vector<32x128xf32>
    %3 = arith.truncf %2 : vector<32x128xf32> to vector<32x128xbf16>
    %c0_3 = arith.constant 0 : index
    %c0_4 = arith.constant 0 : index
    %4 = vector.load %arg3[%c0_3, %c0_4] : memref<32x128xbf16, #tpu.memory_space<vmem>>, vector<32x128xbf16>
    tpu.vector_store %arg3[%c0_3, %c0_4], %3 {strides = array<i32>} : memref<32x128xbf16, #tpu.memory_space<vmem>>, vector<32x128xbf16>,
    return
  }
  func.func @transform_0(%arg0: i32) -> (i32, i32) {
    %c0_i32 = arith.constant 0 : i32
    %c0_i32_0 = arith.constant 0 : i32
    return %arg0, %c0_i32 : i32, i32
  }
  func.func @transform_1(%arg0: i32) -> (i32, i32) {
    %c0_i32 = arith.constant 0 : i32
    %c0_i32_0 = arith.constant 0 : i32
    %c0_i32_1 = arith.constant 0 : i32
    return %c0_i32, %c0_i32_0 : i32, i32
  }
  func.func @transform_2(%arg0: i32) -> (i32, i32) {
    %c0_i32 = arith.constant 0 : i32
    %c0_i32_0 = arith.constant 0 : i32
    return %arg0, %c0_i32 : i32, i32
  }
}

</mosaic_0001>

<bundles_post_ra>
// kernel: tpu_custom_call.1
= control target key start
LH: loop header
LB: loop body
LE: loop exit
PB: predicated region body
PF: predicated region fallthrough
CT: control target
= control target key end

     0   :  { %7 = vsyncpa [#allocation3], 0  ;;  %s928_s0 = inlined_call_operand.hbm [shape: bf16[256,128], index: 0, kind: input, shape index: {}]   ;;  %s929_s1 = inlined_call_operand.hbm [shape: bf16[128,128], index: 1, kind: input, shape index: {}]   ;;  %s930_s2 = inlined_call_operand.hbm [shape: bf16[256,128], index: 2, kind: output, shape index: {}]  }
   0x1   :  { %9 = vsyncpa [#allocation3 + $0x1], 0 }
   0x2   :  { %10 = vsyncpa [#allocation6], 0 }
   0x3   :  { %11 = vsyncpa [#allocation4], 0 }
   0x4   :  { %13 = vsyncpa [#allocation4 + $0x1], 0  ;;  %s726_s9 = smov 0   ;;  %s728_s10 = smov 0  }
   0x5   :  { %s730_s11 = smov 0   ;;  %s732_s12 = smov 0  }
   0x6 LB: > { %s747_s13 = sadd.s32 4294967295, %s702_s12   ;;  %s426_s14 = sadd.s32 4294967294, %s702_s12   ;;  %s702_s12 = sphi %s732_s12, %s949_s12   ;;  %s698_s11 = sphi %s730_s11, %s948_s11   ;;  %s694_s10 = sphi %s728_s10, %s947_s10   ;;  %s690_s9 = sphi %s726_s9, %s946_s9  }
   0x7   : > { %p39_p0 = scmp.ne.s32.totalorder %s694_s10, %s690_s9  ;;  %p931_p1 = scmp.eq.s32.totalorder %s747_s13, 0 }
   0x8   : > { %p90_p3 = scmp.eq.s32.totalorder %s426_s14, 7  ;;  %p427_p5 = scmp.ge.s32.totalorder %s702_s12, 1 }
   0x9   : > { %p756_p4 = por %p931_p1, %p39_p0  ;;  %p97_p7 = scmp.lt.s32.totalorder %s702_s12, 9 }
   0xa   : > { %p761_p6 = por %p90_p3, %p39_p0  ;;  %s704_s18 = smov [#allocation5]  }
   0xb   : > { %s934_s15 = scalar_select %p756_p4, 1, 0 }
   0xc   : > { %s935_s16 = scalar_select %p761_p6, 1, 0 }
   0xd   : > { %p766_p8 = pnand %p427_p5, %p97_p7  ;;  %s109_s19 = sshll.u32 %s704_s18, 4  ;;  %s110_s19 = int_to_ptr.vmem [resolvable:$true] %s109_s19 }
   0xe   : > { %s779_s21 = sadd.s32 1, %s702_s12   ;;  %s26_s22 = sadd.s32 1, %s698_s11 }
   0xf   : > { %s936_s17 = scalar_select %p766_p8, 1, 0 }
  0x10   : > { %p511_p9 = pneg %p766_p8  ;;  %s23_s23 = ssub.s32 %s702_s12, %s779_s21 }
  0x11   : > { %s574_s26 = scalar_lea.hbm %s929_s1, 1024 }
  0x12   : > { %p774_p10 = pnand %p511_p9, %p931_p1  ;;  %p575_p11 = scmp.ne.s32.totalorder %s929_s1, %s574_s26 }
  0x13   : > { %p581_p3 = scmp.lt.u32.totalorder %s574_s26, %s929_s1 }
  0x14   : > { %p576_p12 = pneg %p774_p10 }
  0x16   : > { %p577_p13 = pnand %p576_p12, %p575_p11 }
  0x18   : > { %p578_p0 = pneg %p577_p13 }
  0x1a   : > { %p583_p5 = pnand %p581_p3, %p578_p0 }
  0x1c   : > { %586 = shalt.err (!%p583_p5)
}
  0x1d   : > { %s587_s3 = scalar_lea.vmem %s110_s19, 1024  ;;  %p595_p2 = scmp.lt.s32.totalorder %s110_s19, %s110_s19 }
  0x1e   : > { %p588_p7 = scmp.ne.s32.totalorder %s110_s19, %s587_s3  ;;  %p596_p6 = scmp.lt.s32.totalorder %s587_s3, %s587_s3 }
  0x20   : > { %p590_p9 = pnand %p588_p7, %p576_p12  ;;  %p597_p4 = por %p596_p6, %p595_p2 }
  0x22   : > { %p591_p1 = pneg %p590_p9 }
  0x24   : > { %p598_p8 = pnand %p597_p4, %p591_p1 }
  0x26   : > { %601 = shalt.err (!%p598_p8)
}
  0x27   : > { %s705_s4 = smov 64   ;;  %s706_s5 = smov 4  }
  0x28   : > { %514 = dma.hbm_to_vmem [thread:$0]  (!%p774_p10), %s929_s1, 1024, %s110_s19, [#allocation6], %s705_s4, %s705_s4, %s706_s5  }
  0x29   : > { %p24_p1 = scmp.eq.s32.totalorder %s23_s23, 0  ;;  %p33_p2 = scmp.ne.s32.totalorder %s698_s11, %s694_s10 }
  0x2a   : > { %p34_p4 = scmp.eq.s32.totalorder %s702_s12, 0  ;;  %p524_p6 = scmp.lt.s32.totalorder %s702_s12, 8 }
  0x2b   : > { %s808_s8 = scalar_select %p24_p1, %s698_s11, %s26_s22  }
  0x2c   : > { %p35_p8 = por %p34_p4, %p33_p2  ;;  %p938_p11 = scmp.eq.s32.totalorder %s747_s13, 7 }
  0x2d   : > { %s123_s18 = sand.u32 1, %s698_s11   ;;  %s456_s20 = sshll.u32 %s702_s12, 8 }
  0x2e   : > { %p812_p12 = por %p938_p11, %p33_p2  ;;  %s430_s24 = sshll.u32 %s123_s18, 4 }
  0x2f   : > { %s821_s27 = scalar_lea.hbm %s928_s0, %s456_s20  ;;  %s127_s19 = scalar_lea.vmem [#allocation2], %s430_s24 }
  0x30   : > { %s134_s22 = sshll.u32 %s127_s19, 4  ;;  %p823_p10 = pnand %p524_p6, %p35_p8  ;;  %s827_s22 = int_to_ptr.vmem [resolvable:$true] %s134_s22 }
  0x31   : > { %s829_s28 = scalar_lea.sflag [#allocation3], %s123_s18  ;;  %s602_s29 = scalar_lea.hbm %s821_s27, 256 }
  0x32   : > { %p603_p13 = scmp.ne.s32.totalorder %s821_s27, %s602_s29  ;;  %p604_p0 = pneg %p823_p10 }
  0x33   : > { %s607_s6 = scalar_lea.hbm %s928_s0, 2048  ;;  %p608_p7 = scmp.lt.u32.totalorder %s821_s27, %s928_s0 }
  0x34   : > { %p605_p3 = pnand %p604_p0, %p603_p13  ;;  %p609_p9 = scmp.lt.u32.totalorder %s607_s6, %s602_s29 }
  0x35   : > { %p611_p2 = scmp.lt.u32.totalorder %s602_s29, %s821_s27 }
  0x36   : > { %p606_p5 = pneg %p605_p3  ;;  %p610_p1 = por %p609_p9, %p608_p7 }
  0x38   : > { %p612_p4 = por %p611_p2, %p610_p1 }
  0x3a   : > { %p613_p6 = pnand %p612_p4, %p606_p5 }
  0x3c   : > { %616 = shalt.err (!%p613_p6)
}
  0x3d   : > { %s617_s18 = scalar_lea.vmem %s827_s22, 256  ;;  %s707_s24 = smov [#allocation2]  }
  0x3e   : > { %p618_p8 = scmp.ne.s32.totalorder %s827_s22, %s617_s18  ;;  %s622_s25 = sshll.u32 %s707_s24, 4  ;;  %s623_s25 = int_to_ptr.vmem [resolvable:$false] %s622_s25 }
  0x3f   : > { %s624_s26 = scalar_lea.vmem %s623_s25, 512  ;;  %p625_p3 = scmp.lt.s32.totalorder %s827_s22, %s623_s25 }
  0x40   : > { %p620_p11 = pnand %p618_p8, %p604_p0  ;;  %p626_p7 = scmp.lt.s32.totalorder %s624_s26, %s617_s18 }
  0x42   : > { %p621_p13 = pneg %p620_p11  ;;  %p627_p9 = por %p626_p7, %p625_p3 }
  0x44   : > { %p628_p1 = pnand %p627_p9, %p621_p13 }
  0x46   : > { %631 = shalt.err (!%p628_p1)
}
  0x47   : > { %518 = dma.hbm_to_vmem [thread:$0]  (!%p823_p10), %s821_s27, 256, %s827_s22, %s829_s28, %s705_s4, %s705_s4, %s706_s5  }
  0x48   : > { %p941_p0 = scmp.ne.s32.totalorder %s936_s17, 0 }
  0x49   : > { %s863_s19 = sand.u32 (!%p941_p0), 1, %s694_s10   ;;  %p942_p5 = scmp.ne.s32.totalorder (!%p941_p0), %s934_s15, 0 }
  0x4a   : > { %146 = sbr.rel (%p941_p0) target bundleno = 350 (0x15e), region = 28  ;;  %s434_s29 = sshll.u32 (!%p941_p0), %s863_s19, 4 }
  0x4b   : > { %s149_s30 = scalar_lea.sflag (!%p941_p0), [#allocation3], %s863_s19  ;;  %s152_s23 = scalar_lea.vmem (!%p941_p0), [#allocation2], %s434_s29 }
  0x51   : > { %677 = dma.done.wait (%p942_p5), %s149_s30, 256  }
  0x52   : > { %679 = vsyncadd (%p942_p5), %s149_s30, 4294967040  ;;  %p943_p10 = scmp.eq.s32.totalorder %s747_s13, 0 }
  0x54   : > { %681 = dma.done.wait (%p943_p10), [#allocation6], 1024   ;;  %p944_p2 = pmov %p943_p10 }
  0x55   : > { %v564_v0 = vld [vmem:[#allocation5] sm:$0xff]   ;;  %v565_v1 = vld [vmem:[#allocation5 + $0x8] sm:$0xff]   ;;  %v566_v2 = vld [vmem:[#allocation5 + $0x10] sm:$0xff]   ;;  %s176_s15 = scalar_lea.vmem [#allocation7], %s434_s29  ;;  %s461_s4 = sshll.u32 %s747_s13, 8 }
  0x56   : > { %683 = vsyncadd (%p944_p2), [#allocation6], 4294966272  ;;  %483 = vmatprep.subr.bf16.mxu0 %v564_v0  ;;  %v567_v3 = vld [vmem:[#allocation5 + $0x18] sm:$0xff]   ;;  %v572_v4 = vld [vmem:[%s152_s23] sm:$0xff]   ;;  %s343_s17 = sshll.u32 %s176_s15, 4  ;;  %s885_s22 = scalar_lea.hbm %s930_s2, %s461_s4  ;;  %s880_s17 = int_to_ptr.vmem [resolvable:$true] %s343_s17 }
  0x57   : > { %484 = vmatpush3.bf16.msra.mxu0 %v564_v0  ;;  %499 = vmatprep.mubr.bf16.mxu0 %v572_v4  ;;  %v568_v5 = vld [vmem:[#allocation5 + $0x20] sm:$0xff]   ;;  %v569_v6 = vld [vmem:[#allocation5 + $0x28] sm:$0xff]   ;;  %v570_v7 = vld [vmem:[#allocation5 + $0x30] sm:$0xff]   ;;  %s330_s28 = scalar_lea.sflag [#allocation4], %s863_s19  ;;  %s632_s3 = scalar_lea.vmem %s880_s17, 256 }
  0x58   : > { %485 = vmatprep.subr.bf16.mxu0 %v565_v1  ;;  %v571_v8 = vld [vmem:[#allocation5 + $0x38] sm:$0xff]   ;;  %p633_p4 = scmp.ne.s32.totalorder %s880_s17, %s632_s3  ;;  %s708_s13 = smov [#allocation7]  }
  0x59   : > { %v573_v9 = vld [vmem:[%s152_s23 + $0x8] sm:$0xff]   ;;  %s636_s6 = sshll.u32 %s708_s13, 4  ;;  %s637_s6 = int_to_ptr.vmem [resolvable:$false] %s636_s6 }
  0x5a   : > { %p634_p6 = pnand %p633_p4, %p812_p12  ;;  %s638_s7 = scalar_lea.vmem %s637_s6, 512 }
  0x5b   : > { %486 = vmatpush3.bf16.msra.mxu0 %v565_v1  ;;  %p639_p11 = scmp.lt.s32.totalorder %s880_s17, %s637_s6  ;;  %p640_p13 = scmp.lt.s32.totalorder %s638_s7, %s632_s3 }
  0x5c   : > { %487 = vmatprep.subr.bf16.mxu0 %v566_v2  ;;  %p635_p8 = pneg %p634_p6 }
  0x5d   : > { %p641_p3 = por %p640_p13, %p639_p11 }
  0x5f   : > { %488 = vmatpush3.bf16.msra.mxu0 %v566_v2  ;;  %p642_p7 = pnand %p641_p3, %p635_p8 }
  0x60   : > { %489 = vmatprep.subr.bf16.mxu0 %v567_v3 }
  0x63   : > { %490 = vmatpush3.bf16.msra.mxu0 %v567_v3 }
  0x64   : > { %491 = vmatprep.subr.bf16.mxu0 %v568_v5 }
  0x67   : > { %492 = vmatpush3.bf16.msra.mxu0 %v568_v5 }
  0x68   : > { %493 = vmatprep.subr.bf16.mxu0 %v569_v6 }
  0x6b   : > { %494 = vmatpush3.bf16.msra.mxu0 %v569_v6 }
  0x6c   : > { %495 = vmatprep.subr.bf16.mxu0 %v570_v7 }
  0x6f   : > { %496 = vmatpush3.bf16.msra.mxu0 %v570_v7 }
  0x70   : > { %497 = vmatprep.subr.bf16.mxu0 %v571_v8 }
  0x73   : > { %498 = vmatpush3.bf16.msra.mxu0 %v571_v8 }
  0x76   : > { %500 = vmatmul.mubr.bf16.vlgmr.msra.gmra.mrb[0].mxu0 %v573_v9 }
 0x149   : > { %v501_v10 = vpop.f32.mrb[0].mxu0 }
 0x14a   : > { %v294_v11 = vpop.f32.mrb[1].mxu0 }
 0x14b   : > { %v502_v12 = vpop.f32.mrb[2].mxu0 }
 0x14c   : > { %v470_v13 = vpack.c.bf16 %v502_v12, %v501_v10  ;;  %v297_v14 = vpop.f32.mrb[3].mxu0 }
 0x14d   : > { %v465_v15 = vpack.c.bf16 %v297_v14, %v294_v11 }
 0x14e   : > { %472 = vst [vmem:[%s176_s15 + $0x8] sm:$0xff] %v470_v13  }
 0x14f   : > { %466 = vst [vmem:[%s176_s15] sm:$0xff] %v465_v15  }
 0x150   : > { %645 = shalt.err (!%p642_p7)
}
 0x151   : > { %s646_s20 = scalar_lea.hbm %s885_s22, 256  ;;  %s650_s25 = scalar_lea.hbm %s930_s2, 2048 }
 0x152   : > { %p647_p9 = scmp.ne.s32.totalorder %s885_s22, %s646_s20  ;;  %p651_p5 = scmp.lt.u32.totalorder %s885_s22, %s930_s2 }
 0x153   : > { %p652_p10 = scmp.lt.u32.totalorder %s650_s25, %s646_s20  ;;  %p654_p4 = scmp.lt.u32.totalorder %s646_s20, %s885_s22 }
 0x154   : > { %p648_p1 = pnand %p647_p9, %p812_p12 }
 0x155   : > { %p653_p2 = por %p652_p10, %p651_p5 }
 0x156   : > { %p649_p0 = pneg %p648_p1 }
 0x157   : > { %p655_p6 = por %p654_p4, %p653_p2 }
 0x159   : > { %p656_p8 = pnand %p655_p6, %p649_p0 }
 0x15b   : > { %659 = shalt.err (!%p656_p8)
}
 0x15c   : > { %s709_s30 = smov 64   ;;  %s710_s23 = smov 4  }
 0x15d   : > { %509 = dma.vmem_to_hbm [thread:$0]  (%p812_p12), %s880_s17, 256, %s885_s22, %s330_s28, %s709_s30, %s709_s30, %s710_s23  }
 0x15e PF: > { %p526_p11 = scmp.ge.s32.totalorder %s702_s12, 2  ;;  %s358_s15 = sand.u32 1, %s690_s9  }
 0x15f   : > { %p945_p13 = scmp.ne.s32.totalorder %s935_s16, 0  ;;  %s359_s4 = scalar_lea.sflag [#allocation4], %s358_s15 }
 0x161   : > { %p520_p3 = pnand %p526_p11, %p945_p13 }
 0x163   : > { %685 = dma.done.wait (!%p520_p3), %s359_s4, 256  }
 0x164   : > { %687 = vsyncadd (!%p520_p3), %s359_s4, 4294967040  ;;  %p16_p7 = scmp.ge.s32.totalorder %s779_s21, 10   ;;  %s946_s9 = smov %s694_s10 }
 0x165   : > { %s947_s10 = smov %s698_s11  ;;  %s948_s11 = smov %s808_s8 }
 0x166   : > { %s949_s12 = smov %s779_s21  ;;  %18 = sbr.rel (!%p16_p7) target bundleno = 6 (0x6), region = 77 }
 0x16d   :  { %364 = vsyncpa [#allocation3], 1 }
 0x16e   :  { %366 = vsyncpa [#allocation3 + $0x1], 1 }
 0x16f   :  { %367 = vsyncpa [#allocation6], 1 }
 0x170   :  { %368 = vsyncpa [#allocation4], 1 }
 0x171   :  { %370 = vsyncpa [#allocation4 + $0x1], 1 }

</bundles_post_ra>
